<compile_context>
chip_gen: v5e
topology: v5e:2x2
jax: 0.10.0
libtpu: 0.0.40
codegen_flags: <defaults>
</compile_context>

<pallas_src>
import functools
import numpy as np
import jax
import jax.numpy as jnp
from jax import lax
from jax.experimental import pallas as pl
from jax.experimental.pallas import tpu as pltpu

HIDDEN = 256           # hidden_size in the torch module
D_STATE = 16           # MambaConfig default d_state
D_CONV = 4             # MambaConfig default d_conv
DT_RANK = 16           # ceil(256 / 16)
D_INNER = 2 * HIDDEN   # expand_factor = 2
N_HEADS = HIDDEN // 32 # nn.MultiheadAttention(d_model, d_model // 32)

_VMEM_LIMIT = 32 * 1024 * 1024   # portable VMEM budget (fits v5e/v6e/v7x)
_W_DTYPE = jnp.bfloat16          # storage dtype for large projection weights


# ---------------------------------------------------------------------------
# in-kernel math helpers
# ---------------------------------------------------------------------------
def _sigmoid(y):
    return 1.0 / (1.0 + jnp.exp(-y))


def _softplus(y):
    return jnp.maximum(y, 0.0) + jnp.log(1.0 + jnp.exp(-jnp.abs(y)))


_ERF_P = 0.3275911
_ERF_A = (0.254829592, -0.284496736, 1.421413741, -1.453152027, 1.061405429)


def _erf(z):
    # Abramowitz & Stegun 7.1.26 (|err| <= 1.5e-7): keeps exact-GELU semantics
    # using only EUP-exp + VPU ops.
    za = jnp.abs(z)
    t = 1.0 / (1.0 + _ERF_P * za)
    a1, a2, a3, a4, a5 = _ERF_A
    poly = ((((a5 * t + a4) * t + a3) * t + a2) * t + a1) * t
    e = 1.0 - poly * jnp.exp(-za * za)
    return jnp.where(z >= 0.0, e, -e)


def _gelu(y):
    return 0.5 * y * (1.0 + _erf(y * float(1.0 / np.sqrt(2.0))))


def _wdot(x, w):
    """Matmul with possibly-bf16 weights: cast the (small) activation down, keep
    f32 accumulation. Halves the weight DMA bytes on the DMA-bound linears."""
    return jnp.dot(x.astype(w.dtype), w, preferred_element_type=jnp.float32)


# ---------------------------------------------------------------------------
# Pallas kernels
# ---------------------------------------------------------------------------
def _linear_kernel(x_ref, w_ref, b_ref, o_ref):
    o_ref[...] = _wdot(x_ref[...], w_ref[...]) + b_ref[...]


def _swiglu_kernel(x_ref, w1_ref, b1_ref, w2_ref, b2_ref, w3_ref, b3_ref, o_ref):
    x = x_ref[...]
    x1 = _wdot(x, w1_ref[...]) + b1_ref[...]
    x2 = _wdot(x, w2_ref[...]) + b2_ref[...]
    h = (x1 * _sigmoid(x1)) * x2
    o_ref[...] = _wdot(h, w3_ref[...]) + b3_ref[...]


def _layernorm_kernel(x_ref, g_ref, b_ref, o_ref, *, eps):
    x = x_ref[...]
    mu = jnp.mean(x, axis=-1, keepdims=True)
    xc = x - mu
    var = jnp.mean(xc * xc, axis=-1, keepdims=True)
    o_ref[...] = xc * lax.rsqrt(var + eps) * g_ref[...] + b_ref[...]


def _att_kernel(x_ref, w1_ref, b1_ref, w2_ref, b2_ref, o_ref):
    """Feature_Fusion attention gate: Linear -> GELU -> Linear -> sigmoid (fused)."""
    h = _gelu(_wdot(x_ref[...], w1_ref[...]) + b1_ref[...])
    o_ref[...] = _sigmoid(_wdot(h, w2_ref[...]) + b2_ref[...])


def _pred_net_kernel(x_ref, w1_ref, b1_ref, w2_ref, b2_ref, w3_ref, b3_ref,
                     w4_ref, b4_ref, o_ref):
    """pred_net: BN -> l1 -> GELU -> BN -> l2 -> GELU -> BN -> l3 -> GELU -> l4.

    BatchNorm1d in eval mode with freshly-initialised running stats is x/sqrt(1+eps).
    """
    bn = float(1.0 / np.sqrt(1.0 + 1e-5))
    h = _gelu(_wdot(x_ref[...] * bn, w1_ref[...]) + b1_ref[...])
    h = _gelu(_wdot(h * bn, w2_ref[...]) + b2_ref[...])
    h = _gelu(_wdot(h * bn, w3_ref[...]) + b3_ref[...])
    o_ref[...] = _wdot(h, w4_ref[...]) + b4_ref[...]


def _mha_ln_kernel(x_ref, wqkv_ref, bqkv_ref, wo_ref, bo_ref, g_ref, b_ref, o_ref,
                   *, nheads, scale, eps):
    """Fused multi-head self-attention + residual + LayerNorm (one batch element)."""
    x = x_ref[...]                                   # (L, D)
    L, D = x.shape
    dh = D // nheads
    qkv = _wdot(x, wqkv_ref[...]) + bqkv_ref[...]
    q = qkv[:, :D] * scale
    k = qkv[:, D:2 * D]
    v = qkv[:, 2 * D:]
    heads = []
    for h in range(nheads):                          # static head loop (trace-time unrolled)
        qh = q[:, h * dh:(h + 1) * dh]               # (L, dh)
        kh = k[:, h * dh:(h + 1) * dh]
        vh = v[:, h * dh:(h + 1) * dh]
        s = lax.dot_general(qh, kh, (((1,), (1,)), ((), ())),
                            preferred_element_type=jnp.float32)          # (L, L)
        m = jnp.max(s, axis=-1, keepdims=True)
        p = jnp.exp(s - m)
        p = p / jnp.sum(p, axis=-1, keepdims=True)   # exact softmax (parity)
        heads.append(jnp.dot(p, vh, preferred_element_type=jnp.float32))
    o_cat = jnp.concatenate(heads, axis=-1)          # (L, D) — ONE output projection
    proj = _wdot(o_cat, wo_ref[...])
    y = x + proj + bo_ref[...]
    mu = jnp.mean(y, axis=-1, keepdims=True)
    yc = y - mu
    var = jnp.mean(yc * yc, axis=-1, keepdims=True)
    o_ref[...] = yc * lax.rsqrt(var + eps) * g_ref[...] + b_ref[...]


def _fused_mamba_kernel(x_ref, in_w_ref, in_b_ref, conv_w_ref, conv_b_ref,
                        wdelta_ref, dt_b_ref, bc_w_ref, A_ref, D_ref,
                        out_w_ref, out_b_ref, o_ref, da_scr, gb_scr, h_scr):
    """One MambaBlock forward for one (direction, batch) sequence.

    in_proj -> causal depthwise conv -> SiLU -> fused x_proj/dt_proj -> selective
    scan (invariants hoisted out of the recurrence) -> D skip -> SiLU(z) gate ->
    out_proj.
    """
    L = x_ref.shape[0]
    N = A_ref.shape[0]
    ED = A_ref.shape[1]
    K = conv_w_ref.shape[0]

    x = x_ref[...]                                                        # (L, D)
    xz = _wdot(x, in_w_ref[...]) + in_b_ref[...]                          # (L, 2ED)
    xc = xz[:, :ED]
    z = xz[:, ED:]

    # --- causal depthwise conv (kernel K) + SiLU via zero-pad + static slices ---
    PADR = 8                                                              # sublane-tile aligned pad
    xpad = jnp.concatenate([jnp.zeros((PADR, ED), jnp.float32), xc], axis=0)
    acc = conv_b_ref[...]
    for k in range(K):
        off = PADR - (K - 1) + k                                          # slice[t] = xc[t-(K-1-k)]
        acc = acc + xpad[off:off + L, :] * conv_w_ref[pl.ds(k, 1), :]
    xc = acc * _sigmoid(acc)

    # --- fused x_proj / dt_proj --------------------------------------------------
    delta = _softplus(_wdot(xc, wdelta_ref[...]) + dt_b_ref[...])         # (L, ED)
    bc = jnp.dot(xc, bc_w_ref[...], preferred_element_type=jnp.float32)   # (L, 2N)
    Bm = bc[:, :N]                                                        # (L, N)
    Cm = bc[:, N:]                                                        # (L, N)

    # --- hoist loop-invariant per-step terms (EUP exp / VPU muls pipelined here) --
    A = A_ref[...]                                                        # (N, ED)
    da_scr[...] = jnp.exp(delta[:, None, :] * A[None, :, :])              # (L, N, ED)
    gb_scr[...] = (delta * xc)[:, None, :] * Bm[:, :, None]               # (L, N, ED)

    # --- serial recurrence: per step just 2 dense loads + 1 FMA + 1 dense store ---
    h = jnp.zeros((N, ED), jnp.float32)
    for t in range(L):                            # trace-time unrolled (L is 8/16)
        h = da_scr[t] * h + gb_scr[t]
        h_scr[t] = h

    # --- y_t = sum_n C[t,n] * h[t,n,:]  (vectorised, outside the loop) ------------
    y = jnp.sum(h_scr[...] * Cm[:, :, None], axis=1)                      # (L, ED)
    y = y + xc * D_ref[...]
    y = y * (z * _sigmoid(z))                                             # SiLU(z) gate
    o_ref[...] = _wdot(y, out_w_ref[...]) + out_b_ref[...]


# ---------------------------------------------------------------------------
# Pallas wrappers
# ---------------------------------------------------------------------------
def _pallas_full(kernel, out_sds, args):
    # Single-block kernel (rows here are tiny: B=2 .. B*L=32, Nn=14).
    # TODO(synk): on v7x, split the lane dim over a 2-way "parallel" grid so the
    #             second TensorCore is not idle; keep grid=(1,) on v5e/v6e.
    in_specs = [pl.BlockSpec(a.shape, lambda i, n=a.ndim: (0,) * n) for a in args]
    out_spec = pl.BlockSpec(out_sds.shape, lambda i, n=len(out_sds.shape): (0,) * n)
    return pl.pallas_call(
        kernel, out_shape=out_sds, grid=(1,),
        in_specs=in_specs, out_specs=out_spec,
        compiler_params=pltpu.CompilerParams(vmem_limit_bytes=_VMEM_LIMIT),
    )(*args)


def linear(x, w, b=None):
    M = x.shape[0]
    N = w.shape[1]
    if b is None:
        b = jnp.zeros((N,), jnp.float32)
    return _pallas_full(_linear_kernel,
                        jax.ShapeDtypeStruct((M, N), jnp.float32),
                        (x, w, b.reshape(1, N)))


def swiglu(x, p):
    M = x.shape[0]
    H = p["w1"].shape[1]
    O = p["w3"].shape[1]
    return _pallas_full(_swiglu_kernel,
                        jax.ShapeDtypeStruct((M, O), jnp.float32),
                        (x, p["w1"], p["b1"].reshape(1, H),
                         p["w2"], p["b2"].reshape(1, H),
                         p["w3"], p["b3"].reshape(1, O)))


def layernorm(x, gamma, beta, eps=1e-5):
    shp = x.shape
    D = shp[-1]
    x2 = x.reshape(-1, D)
    out = _pallas_full(functools.partial(_layernorm_kernel, eps=eps),
                       jax.ShapeDtypeStruct(x2.shape, jnp.float32),
                       (x2, gamma.reshape(1, D), beta.reshape(1, D)))
    return out.reshape(shp)


def mha_ln(p, gamma, beta, x):
    """Fused MHA + residual + LayerNorm, grid over batch."""
    Bb, L, D = x.shape
    scale = 1.0 / np.sqrt(D // N_HEADS)
    return pl.pallas_call(
        functools.partial(_mha_ln_kernel, nheads=N_HEADS, scale=scale, eps=1e-5),
        out_shape=jax.ShapeDtypeStruct((Bb, L, D), jnp.float32),
        grid=(Bb,),
        in_specs=[pl.BlockSpec((None, L, D), lambda i: (i, 0, 0)),
                  pl.BlockSpec((D, 3 * D), lambda i: (0, 0)),
                  pl.BlockSpec((1, 3 * D), lambda i: (0, 0)),
                  pl.BlockSpec((D, D), lambda i: (0, 0)),
                  pl.BlockSpec((1, D), lambda i: (0, 0)),
                  pl.BlockSpec((1, D), lambda i: (0, 0)),
                  pl.BlockSpec((1, D), lambda i: (0, 0))],
        out_specs=pl.BlockSpec((None, L, D), lambda i: (i, 0, 0)),
        compiler_params=pltpu.CompilerParams(dimension_semantics=("parallel",),
                                             vmem_limit_bytes=_VMEM_LIMIT),
    )(x, p["in_proj_w"], p["in_proj_b"].reshape(1, -1),
      p["out_proj_w"], p["out_proj_b"].reshape(1, -1),
      gamma.reshape(1, -1), beta.reshape(1, -1))


def _mamba_dir_arrays(p):
    """Per-direction (non-tied) Mamba weights in the kernel's layout."""
    w_delta = jnp.dot(p["x_proj_w"][:, :DT_RANK], p["dt_proj_w"]).astype(_W_DTYPE)
    return {
        "conv_w": p["conv_w"].T,                                         # (K, ED)
        "conv_b": p["conv_b"].reshape(1, -1),                            # (1, ED)
        "wdelta": w_delta,                                               # (ED, ED) bf16
        "dt_b": p["dt_proj_b"].reshape(1, -1),                           # (1, ED)
        "bc_w": p["x_proj_w"][:, DT_RANK:],                              # (ED, 2N)
        "A": -jnp.exp(p["A_log"]).T,                                     # (N, ED)
        "D": p["D"].reshape(1, -1),                                      # (1, ED)
    }


def _stack_dirs(p_list):
    ds = [_mamba_dir_arrays(p) for p in p_list]
    return {k: jnp.stack([d[k] for d in ds], axis=0) for k in ds[0]}


def fused_mamba(x_all, tied, dirs, n_dir):
    """Run n_dir Mamba directions (tied in/out proj) over a (n_dir*B, L, D) batch."""
    NDB, L, Dm = x_all.shape
    B = NDB // n_dir
    ED = tied["in_w"].shape[1] // 2
    N = dirs["A"].shape[1]
    # TODO(synk): for production-size L, hoist in_proj/out_proj into one lane-dense
    #             matmul over all NDB*L rows feeding the scan kernel.
    # TODO(synk): constant-index weight specs could use pipeline_mode=pl.Buffered(1)
    #             to save VMEM headroom on v7x (64 MiB).
    in_specs = [
        pl.BlockSpec((None, L, Dm), lambda i: (i, 0, 0)),                 # x
        pl.BlockSpec((Dm, 2 * ED), lambda i: (0, 0)),                     # in_proj w (tied)
        pl.BlockSpec((1, 2 * ED), lambda i: (0, 0)),                      # in_proj b
        pl.BlockSpec((None, D_CONV, ED), lambda i: (i // B, 0, 0)),       # conv w
        pl.BlockSpec((None, 1, ED), lambda i: (i // B, 0, 0)),            # conv b
        pl.BlockSpec((None, ED, ED), lambda i: (i // B, 0, 0)),           # W_delta
        pl.BlockSpec((None, 1, ED), lambda i: (i // B, 0, 0)),            # dt bias
        pl.BlockSpec((None, ED, 2 * N), lambda i: (i // B, 0, 0)),        # B/C proj
        pl.BlockSpec((None, N, ED), lambda i: (i // B, 0, 0)),            # A
        pl.BlockSpec((None, 1, ED), lambda i: (i // B, 0, 0)),            # D
        pl.BlockSpec((ED, Dm), lambda i: (0, 0)),                         # out_proj w (tied)
        pl.BlockSpec((1, Dm), lambda i: (0, 0)),                          # out_proj b
    ]
    return pl.pallas_call(
        _fused_mamba_kernel,
        out_shape=jax.ShapeDtypeStruct((NDB, L, Dm), jnp.float32),
        grid=(NDB,),
        in_specs=in_specs,
        out_specs=pl.BlockSpec((None, L, Dm), lambda i: (i, 0, 0)),
        scratch_shapes=[pltpu.VMEM((L, N, ED), jnp.float32),   # exp(delta*A)
                        pltpu.VMEM((L, N, ED), jnp.float32),   # (delta*x)*B
                        pltpu.VMEM((L, N, ED), jnp.float32)],  # scan states h
        compiler_params=pltpu.CompilerParams(dimension_semantics=("parallel",),
                                             vmem_limit_bytes=_VMEM_LIMIT),
    )(x_all, tied["in_w"], tied["in_b"].reshape(1, -1),
      dirs["conv_w"], dirs["conv_b"], dirs["wdelta"], dirs["dt_b"],
      dirs["bc_w"], dirs["A"], dirs["D"],
      tied["out_w"], tied["out_b"].reshape(1, -1))


# ---------------------------------------------------------------------------
# Model components
# ---------------------------------------------------------------------------
def mamba_block(p, x):
    tied = {"in_w": p["in_proj_w"], "in_b": p["in_proj_b"],
            "out_w": p["out_proj_w"], "out_b": p["out_proj_b"]}
    return fused_mamba(x, tied, _stack_dirs([p]), n_dir=1)


def bidir_mamba(p, x):
    Bb = x.shape[0]
    x_all = jnp.concatenate([x, x[:, ::-1, :]], axis=0)                   # (2B, L, D)
    tied = {"in_w": p["mixer"]["in_proj_w"], "in_b": p["mixer"]["in_proj_b"],
            "out_w": p["mixer"]["out_proj_w"], "out_b": p["mixer"]["out_proj_b"]}
    y = fused_mamba(x_all, tied, _stack_dirs([p["mixer"], p["mixer_back"]]), n_dir=2)
    fwd = y[:Bb]
    bwd = y[Bb:, ::-1, :]
    return layernorm(x + fwd + bwd, p["ln_g"], p["ln_b"])


def am_layer(p, x):
    x = mha_ln(p["mha"], p["norm1_g"], p["norm1_b"], x)   # attn + residual + LN fused
    return bidir_mamba(p["mamba"], x)


def graph_norm(p, x, eps=1e-5):
    # The spec's GPSConv calls self.bn(h) without `batch`, so PyG GraphNorm pools
    # statistics over all nodes in the batch — reproduced here.
    mean = jnp.mean(x, axis=0, keepdims=True)
    out = x - mean * p["mean_scale"][None, :]
    var = jnp.mean(out * out, axis=0, keepdims=True)
    return p["weight"][None, :] * out / jnp.sqrt(var + eps) + p["bias"][None, :]


def transformer_conv(p, x, edge_index, edge_attr):
    # TODO(synk): segment-softmax / scatter aggregation stays in JAX (no clean Pallas scatter).
    Nn = x.shape[0]
    H = HIDDEN
    src, dst = edge_index[0], edge_index[1]
    # fused q/k/v/skip projections: one lane-dense (256 -> 1024) matmul
    w_cat = jnp.concatenate([p["lin_query"]["w"], p["lin_key"]["w"],
                             p["lin_value"]["w"], p["lin_skip"]["w"]], axis=1)
    b_cat = jnp.concatenate([p["lin_query"]["b"], p["lin_key"]["b"],
                             p["lin_value"]["b"], p["lin_skip"]["b"]])
    qkvs = linear(x, w_cat, b_cat)
    q, k, v, x_r = (qkvs[:, :H], qkvs[:, H:2 * H], qkvs[:, 2 * H:3 * H], qkvs[:, 3 * H:])
    e = linear(edge_attr, p["lin_edge"]["w"])            # bias=False
    k_j = k[src] + e
    v_j = v[src] + e
    q_i = q[dst]
    alpha = jnp.sum(q_i * k_j, axis=-1) / np.sqrt(H)
    amax = jax.ops.segment_max(alpha, dst, num_segments=Nn)
    ex = jnp.exp(alpha - amax[dst])
    denom = jax.ops.segment_sum(ex, dst, num_segments=Nn)
    alpha = ex / (denom[dst] + 1e-16)
    out = jax.ops.segment_sum(v_j * alpha[:, None], dst, num_segments=Nn)
    # beta gate: 1-lane output -> plain JAX (avoids a lane-sparse Pallas store)
    cat = jnp.concatenate([out, x_r, out - x_r], axis=-1)
    beta = jax.nn.sigmoid(cat @ p["lin_beta"]["w"])
    return beta * x_r + (1.0 - beta) * out


def to_dense_batch(x, batch_np, num_graphs):
    Nn, C = x.shape
    counts = np.bincount(batch_np, minlength=num_graphs)
    max_nodes = int(counts.max())
    starts = np.concatenate([[0], np.cumsum(counts)[:-1]]).astype(np.int64)
    pos = np.arange(Nn) - starts[batch_np]
    dense = jnp.zeros((num_graphs, max_nodes, C), x.dtype).at[batch_np, pos].set(x)
    return dense, (batch_np, pos)


def gps_conv(p, x, edge_index, edge_attr, batch_np, num_graphs):
    h = transformer_conv(p["conv"], x, edge_index, edge_attr)
    h = linear(h, p["linear"]["w"], p["linear"]["b"])
    h = h + x                                 # dropout: eval-mode identity
    h1 = graph_norm(p["bn"], h)
    dense, (b_idx, pos) = to_dense_batch(x, batch_np, num_graphs)
    dense = bidir_mamba(p["attn"], dense)
    h = dense[b_idx, pos]                     # == h[mask]
    h = h + x
    h2 = graph_norm(p["bn"], h)
    out = h1 + h2
    out = out + swiglu(out, p["mlp"])
    return graph_norm(p["bn"], out)


def feature_fusion(p, fd, fp):
    def att(z):
        return _pallas_full(_att_kernel,
                            jax.ShapeDtypeStruct((z.shape[0], HIDDEN), jnp.float32),
                            (z, p["w1"], p["b1"].reshape(1, -1),
                             p["w2"], p["b2"].reshape(1, -1)))

    w1 = att(jnp.concatenate([fd, fp], axis=1))
    fout1 = jnp.concatenate([fd * w1, fp * (1.0 - w1)], axis=1)
    w2 = att(fout1)
    return jnp.concatenate([fd * w2, fp * (1.0 - w2)], axis=1)


def multimodal_gating(p, mg, ms, mp):
    mg = swiglu(mg, p["gated_g"])
    ms = swiglu(ms, p["gated_s"])
    mp = swiglu(mp, p["gated_p"])
    f1 = feature_fusion(p["ff1"], mg, mp)
    f2 = feature_fusion(p["ff2"], ms, mp)
    return jnp.concatenate([f1, f2], axis=1)


def pred_net(p, x):
    # Whole BN/Linear/GELU chain fused into one pallas_call.
    return _pallas_full(
        _pred_net_kernel,
        jax.ShapeDtypeStruct((x.shape[0], 1), jnp.float32),
        (x,
         p["l1"]["w"], p["l1"]["b"].reshape(1, -1),
         p["l2"]["w"], p["l2"]["b"].reshape(1, -1),
         p["l3"]["w"], p["l3"]["b"].reshape(1, -1),
         p["l4"]["w"], p["l4"]["b"].reshape(1, -1)))


def model_forward(params, pro_seq_id, smiles_id, mol_graph, num_graphs):
    gx = linear(mol_graph["x"], params["x2h"]["w"], params["x2h"]["b"])
    gx = gps_conv(params["gps1"], gx, mol_graph["edge_index"], mol_graph["edge_attr"],
                  mol_graph["batch"], num_graphs)
    mol_graph_x = jax.ops.segment_max(gx, jnp.asarray(mol_graph["batch"]),
                                      num_segments=num_graphs)        # global_max_pool

    prot = params["prot_embedding"][pro_seq_id]
    comp = params["comp_embedding"][smiles_id]
    prot = mamba_block(params["pre_mamba_prot"], prot)
    comp = mamba_block(params["pre_mamba_comp"], comp)
    prot = am_layer(params["prot_mamba"], prot)
    comp = am_layer(params["comp_mamba"], comp)
    comp = jnp.max(comp, axis=1)               # Reduce('b n d -> b d', 'max')
    prot = jnp.max(prot, axis=1)
    cp = multimodal_gating(params["fusion"], mol_graph_x, comp, prot)
    return pred_net(params["pred"], cp)


# ---------------------------------------------------------------------------
# Deterministic parameter init (shapes follow the torch module's __init__)
# ---------------------------------------------------------------------------
class _KeyGen:
    def __init__(self, key):
        self._key = key

    def __call__(self):
        self._key, sub = jax.random.split(self._key)
        return sub


def init_params(key):
    kg = _KeyGen(key)
    D = HIDDEN

    def lin_p(fi, fo, bias=True, wdtype=jnp.float32):
        w = (jax.random.normal(kg(), (fi, fo), jnp.float32) * (1.0 / np.sqrt(fi))).astype(wdtype)
        b = (jax.random.normal(kg(), (fo,), jnp.float32) * 0.02 if bias
             else jnp.zeros((fo,), jnp.float32))
        return {"w": w, "b": b}

    def swiglu_p(fi, hidden):
        a = lin_p(fi, hidden, wdtype=_W_DTYPE)
        b_ = lin_p(fi, hidden, wdtype=_W_DTYPE)
        c = lin_p(hidden, fi, wdtype=_W_DTYPE)
        return {"w1": a["w"], "b1": a["b"], "w2": b_["w"], "b2": b_["b"],
                "w3": c["w"], "b3": c["b"]}

    def ln_p():
        return jnp.ones((D,), jnp.float32), jnp.zeros((D,), jnp.float32)

    def mamba_p(tie=None):
        p = {}
        if tie is None:
            ip = lin_p(D, 2 * D_INNER, wdtype=_W_DTYPE)
            op = lin_p(D_INNER, D, wdtype=_W_DTYPE)
            p["in_proj_w"], p["in_proj_b"] = ip["w"], ip["b"]
            p["out_proj_w"], p["out_proj_b"] = op["w"], op["b"]
        else:  # weight_tie=True in BidirMambaBlock
            for nm in ("in_proj_w", "in_proj_b", "out_proj_w", "out_proj_b"):
                p[nm] = tie[nm]
        p["conv_w"] = jax.random.normal(kg(), (D_INNER, D_CONV), jnp.float32) * 0.3
        p["conv_b"] = jnp.zeros((D_INNER,), jnp.float32)
        p["x_proj_w"] = lin_p(D_INNER, DT_RANK + 2 * D_STATE, bias=False)["w"]
        dp = lin_p(DT_RANK, D_INNER)
        p["dt_proj_w"], p["dt_proj_b"] = dp["w"], dp["b"]
        p["A_log"] = jnp.log(jnp.tile(jnp.arange(1, D_STATE + 1, dtype=jnp.float32)[None, :],
                                      (D_INNER, 1)))
        p["D"] = jnp.ones((D_INNER,), jnp.float32)
        return p

    def bidir_p():
        m = mamba_p()
        g, b_ = ln_p()
        return {"mixer": m, "mixer_back": mamba_p(tie=m), "ln_g": g, "ln_b": b_}

    def am_p():
        mha_in = lin_p(D, 3 * D, wdtype=_W_DTYPE)
        mha_out = lin_p(D, D, wdtype=_W_DTYPE)
        g, b_ = ln_p()
        return {"mha": {"in_proj_w": mha_in["w"], "in_proj_b": mha_in["b"],
                        "out_proj_w": mha_out["w"], "out_proj_b": mha_out["b"]},
                "norm1_g": g, "norm1_b": b_, "mamba": bidir_p()}

    def gps_p(edge_dim):
        return {"conv": {"lin_key": lin_p(D, D, wdtype=_W_DTYPE),
                         "lin_query": lin_p(D, D, wdtype=_W_DTYPE),
                         "lin_value": lin_p(D, D, wdtype=_W_DTYPE),
                         "lin_edge": lin_p(edge_dim, D, bias=False, wdtype=_W_DTYPE),
                         "lin_skip": lin_p(D, D, wdtype=_W_DTYPE),
                         "lin_beta": lin_p(3 * D, 1, bias=False)},
                "linear": lin_p(D, D, wdtype=_W_DTYPE),
                "attn": bidir_p(), "mlp": swiglu_p(D, 4 * D),
                "bn": {"weight": jnp.ones((D,), jnp.float32),
                       "bias": jnp.zeros((D,), jnp.float32),
                       "mean_scale": jnp.ones((D,), jnp.float32)}}

    def ff_p():
        # att1 and att2 in Feature_Fusion share the SAME modules in the torch code
        a = lin_p(2 * D, 3 * D, wdtype=_W_DTYPE)
        c = lin_p(3 * D, D, wdtype=_W_DTYPE)
        return {"w1": a["w"], "b1": a["b"], "w2": c["w"], "b2": c["b"]}

    return {
        "comp_embedding": jax.random.normal(kg(), (64, D), jnp.float32) * 0.02,
        "prot_embedding": jax.random.normal(kg(), (25, D), jnp.float32) * 0.02,
        "x2h": lin_p(26, D),
        "gps1": gps_p(14),
        "pre_mamba_comp": mamba_p(),
        "pre_mamba_prot": mamba_p(),
        "prot_mamba": am_p(),
        "comp_mamba": am_p(),
        "fusion": {"gated_g": swiglu_p(D, 4 * D), "gated_s": swiglu_p(D, 4 * D),
                   "gated_p": swiglu_p(D, 4 * D), "ff1": ff_p(), "ff2": ff_p()},
        "pred": {"l1": lin_p(4 * D, 1024, wdtype=_W_DTYPE),
                 "l2": lin_p(1024, 1024, wdtype=_W_DTYPE),
                 "l3": lin_p(1024, 512, wdtype=_W_DTYPE),
                 "l4": lin_p(512, 1, wdtype=_W_DTYPE)},
    }


# ---------------------------------------------------------------------------
if __name__ == "__main__":
    root = jax.random.PRNGKey(0)
    (k_params, k_prot, k_comp, k_x, k_s0, k_d0, k_s1, k_d1, k_ea) = jax.random.split(root, 9)
    params = init_params(k_params)

    B = 2
    Lp, Lc = 16, 8
    pro_seq_id = jax.random.randint(k_prot, (B, Lp), 0, 25)
    smiles_id = jax.random.randint(k_comp, (B, Lc), 0, 64)

    # synthetic molecular graph: graph0 has 8 nodes, graph1 has 6 nodes
    n0, n1 = 8, 6
    Nn = n0 + n1
    e0, e1 = 16, 12
    node_x = jax.random.normal(k_x, (Nn, 26), jnp.float32)
    src = jnp.concatenate([jax.random.randint(k_s0, (e0,), 0, n0),
                           jax.random.randint(k_s1, (e1,), 0, n1) + n0])
    dst = jnp.concatenate([jax.random.randint(k_d0, (e0,), 0, n0),
                           jax.random.randint(k_d1, (e1,), 0, n1) + n0])
    edge_index = jnp.stack([src, dst]).astype(jnp.int32)
    edge_attr = jax.random.normal(k_ea, (e0 + e1, 14), jnp.float32)
    batch = np.array([0] * n0 + [1] * n1, dtype=np.int32)
    mol_graph = {"x": node_x, "edge_index": edge_index,
                 "edge_attr": edge_attr, "batch": batch}

    pred = model_forward(params, pro_seq_id, smiles_id, mol_graph, num_graphs=B)
    pred = jax.block_until_ready(pred)
    assert pred.shape == (B, 1)
    assert bool(jnp.all(jnp.isfinite(pred)))
    print("KERNEL_OK")
</pallas_src>

<mosaic_0001>
module attributes {stable_mosaic.version = 11 : i64} {
  func.func @_linear_kernel(%arg0: i32, %arg1: memref<14x26xf32, #tpu.memory_space<vmem>>, %arg2: memref<26x256xf32, #tpu.memory_space<vmem>>, %arg3: memref<1x256xf32, #tpu.memory_space<vmem>>, %arg4: memref<14x256xf32, #tpu.memory_space<vmem>>) attributes {dimension_semantics = [#tpu.dimension_semantics<arbitrary>], iteration_bounds = array<i64: 1>, scalar_prefetch = 0 : i64, scratch_operands = 0 : i64, tpu.core_type = #tpu.core_type<tc>, window_params = [{pipeline_mode = #tpu.pipeline_mode<synchronous>, transform_indices = @transform_0, window_bounds = array<i64: 14, 26>}, {pipeline_mode = #tpu.pipeline_mode<synchronous>, transform_indices = @transform_1, window_bounds = array<i64: 26, 256>}, {pipeline_mode = #tpu.pipeline_mode<synchronous>, transform_indices = @transform_2, window_bounds = array<i64: 1, 256>}, {pipeline_mode = #tpu.pipeline_mode<synchronous>, transform_indices = @transform_3, window_bounds = array<i64: 14, 256>}]} {
    %c0 = arith.constant 0 : index
    %c0_0 = arith.constant 0 : index
    %0 = vector.load %arg1[%c0, %c0_0] : memref<14x26xf32, #tpu.memory_space<vmem>>, vector<14x26xf32>
    %c0_1 = arith.constant 0 : index
    %c0_2 = arith.constant 0 : index
    %1 = vector.load %arg2[%c0_1, %c0_2] : memref<26x256xf32, #tpu.memory_space<vmem>>, vector<26x256xf32>
    %cst = arith.constant dense<0.000000e+00> : vector<14x256xf32>
    %2 = tpu.matmul %0, %1, %cst {dimension_numbers = #tpu.dot_dimension_numbers<[1], [0], [0], [1], [0, 0, 1, 1], [], []>} : vector<14x26xf32>, vector<26x256xf32>, vector<14x256xf32> -> vector<14x256xf32>
    %c0_3 = arith.constant 0 : index
    %c0_4 = arith.constant 0 : index
    %3 = vector.load %arg3[%c0_3, %c0_4] : memref<1x256xf32, #tpu.memory_space<vmem>>, vector<1x256xf32>
    %4 = vector.broadcast %3 : vector<1x256xf32> to vector<14x256xf32>
    %5 = arith.addf %2, %4 : vector<14x256xf32>
    %c0_5 = arith.constant 0 : index
    %c0_6 = arith.constant 0 : index
    %6 = vector.load %arg4[%c0_5, %c0_6] : memref<14x256xf32, #tpu.memory_space<vmem>>, vector<14x256xf32>
    tpu.vector_store %arg4[%c0_5, %c0_6], %5 {strides = array<i32>} : memref<14x256xf32, #tpu.memory_space<vmem>>, vector<14x256xf32>,
    return
  }
  func.func @transform_0(%arg0: i32) -> (i32, i32) {
    %c0_i32 = arith.constant 0 : i32
    %c0_i32_0 = arith.constant 0 : i32
    %c0_i32_1 = arith.constant 0 : i32
    return %c0_i32, %c0_i32_0 : i32, i32
  }
  func.func @transform_1(%arg0: i32) -> (i32, i32) {
    %c0_i32 = arith.constant 0 : i32
    %c0_i32_0 = arith.constant 0 : i32
    %c0_i32_1 = arith.constant 0 : i32
    return %c0_i32, %c0_i32_0 : i32, i32
  }
  func.func @transform_2(%arg0: i32) -> (i32, i32) {
    %c0_i32 = arith.constant 0 : i32
    %c0_i32_0 = arith.constant 0 : i32
    %c0_i32_1 = arith.constant 0 : i32
    return %c0_i32, %c0_i32_0 : i32, i32
  }
  func.func @transform_3(%arg0: i32) -> (i32, i32) {
    %c0_i32 = arith.constant 0 : i32
    %c0_i32_0 = arith.constant 0 : i32
    %c0_i32_1 = arith.constant 0 : i32
    return %c0_i32, %c0_i32_0 : i32, i32
  }
}

</mosaic_0001>

<bundles_post_ra>
// kernel: tpu_custom_call.1
= control target key start
LH: loop header
LB: loop body
LE: loop exit
PB: predicated region body
PF: predicated region fallthrough
CT: control target
= control target key end

     0   :  { %8 = vsyncpa [#allocation3], 0  ;;  %s330_s0 = inlined_call_operand.hbm [shape: f32[14,26], index: 0, kind: input, shape index: {}]   ;;  %s331_s1 = inlined_call_operand.hbm [shape: f32[26,256], index: 1, kind: input, shape index: {}]   ;;  %s332_s2 = inlined_call_operand.hbm [shape: f32[1,256], index: 2, kind: input, shape index: {}]   ;;  %s333_s3 = inlined_call_operand.hbm [shape: f32[14,256], index: 3, kind: output, shape index: {}]  }
   0x1   :  { %9 = vsyncpa [#allocation6], 0  ;;  %s28_s14 = sshll.u32 %s331_s1, 4  ;;  %s29_s14 = int_to_ptr.hbm [resolvable:$true] %s28_s14 }
   0x2   :  { %10 = vsyncpa [#allocation4], 0  ;;  %s284_s15 = smov [#allocation5]   ;;  %s15_s19 = sshll.u32 %s330_s0, 4  ;;  %s16_s19 = int_to_ptr.hbm [resolvable:$true] %s15_s19 }
   0x3   :  { %s30_s16 = sshll.u32 %s284_s15, 4  ;;  %s285_s20 = smov 256   ;;  %s31_s16 = int_to_ptr.vmem [resolvable:$true] %s30_s16 }
   0x4   :  { %s286_s21 = smov 16   ;;  %s287_s22 = smov [#allocation2]  }
   0x5   :  { %36 = dma.hbm_to_vmem [thread:$0]  %s29_s14, 1024, %s31_s16, [#allocation6], %s285_s20, %s285_s20, %s286_s21  }
   0x6   :  { %s17_s23 = sshll.u32 %s287_s22, 4  ;;  %s288_s1 = smov 128   ;;  %s18_s23 = int_to_ptr.vmem [resolvable:$true] %s17_s23 }
   0x7   :  { %s289_s24 = smov 8   ;;  %s42_s27 = sshll.u32 %s332_s2, 4  ;;  %s43_s27 = int_to_ptr.hbm [resolvable:$true] %s42_s27 }
   0x8   :  { %23 = dma.hbm_to_vmem [thread:$0]  %s16_s19, 256, %s18_s23, [#allocation3], %s288_s1, %s288_s1, %s289_s24  }
   0x9   :  { %s290_s28 = smov [#allocation7]  }
   0xa   :  { %s44_s0 = sshll.u32 %s290_s28, 4  ;;  %s45_s0 = int_to_ptr.vmem [resolvable:$true] %s44_s0 }
   0xb   :  { %47 = dma.hbm_to_vmem [thread:$0]  %s43_s27, 32, %s45_s0, [#allocation6]  }
   0xc   :  { %278 = dma.done.wait [#allocation3], 256  }
   0xd   :  { %279 = vsyncadd [#allocation3], 4294967040 }
   0xe   :  { %280 = dma.done.wait [#allocation6], 1056  }
   0xf   :  { %281 = vsyncadd [#allocation6], 4294966240  ;;  %vm83_vm0 = vcmask 1041408   ;;  %v68_v0 = vld [vmem:[#allocation5 + $0x30] sm:$0x3]  ;;  %v66_v2 = vld [vmem:[#allocation5 + $0x20] sm:$0xff] }
  0x10   :  { %v69_v1 = vld [vmem:[#allocation5 + $0x38] sm:$0x3]  ;;  %166 = vmatpush.msk.msra.mxu2 %vm83_vm0, %v68_v0  ;;  %v67_v3 = vld [vmem:[#allocation5 + $0x28] sm:$0xff]  ;;  %v64_v4 = vld [vmem:[#allocation5 + $0x10] sm:$0xff]  ;;  %160 = vmatpush.msk.msra.mxu0 %vm83_vm0, %v68_v0  ;;  %vm76_vm1 = vcmask 211968   ;;  %s291_s2 = smov [#allocation8]  }
  0x11   :  { %170 = vmatpush.msk.msra.mxu3 %vm83_vm0, %v69_v1  ;;  %v65_v5 = vld [vmem:[#allocation5 + $0x18] sm:$0xff]  ;;  %163 = vmatpush.msk.msra.mxu1 %vm83_vm0, %v69_v1  ;;  %v62_v6 = vld [vmem:[#allocation5] sm:$0xff]  ;;  %v63_v7 = vld [vmem:[#allocation5 + $0x8] sm:$0xff]  ;;  %s144_s29 = sshll.u32 %s291_s2, 4  ;;  %s146_s5 = sshll.u32 %s333_s3, 4  ;;  %s145_s29 = int_to_ptr.vmem [resolvable:$true] %s144_s29  ;;  %s147_s5 = int_to_ptr.hbm [resolvable:$true] %s146_s5 }
  0x12   :  { %167 = vmatpush.msra.mxu2 %v66_v2  ;;  %103 = vmatpush.msra.mxu0 %v66_v2  ;;  %v61_v8 = vld [vmem:[#allocation2 + $0x8] sm:$0x3f]  ;;  %v60_v9 = vld [vmem:[#allocation2] sm:$0xff]  ;;  %v70_v10 = vld [vmem:[#allocation7] sm:$0x3] }
  0x13   :  { %171 = vmatpush.msra.mxu3 %v67_v3  ;;  %126 = vmatpush.msra.mxu1 %v67_v3  ;;  %v72_v11 = vperm.slane %v70_v10, 0  ;;  %v73_v12 = vperm.slane %v70_v10, 1 }
  0x14   :  { %168 = vmatpush.msra.mxu2 %v64_v4  ;;  %104 = vmatpush.msra.mxu0 %v64_v4 }
  0x15   :  { %172 = vmatpush.msra.mxu3 %v65_v5  ;;  %127 = vmatpush.msra.mxu1 %v65_v5 }
  0x16   :  { %169 = vmatpush.msra.mxu2 %v62_v6  ;;  %105 = vmatpush.msra.mxu0 %v62_v6 }
  0x17   :  { %173 = vmatpush.msra.mxu3 %v63_v7  ;;  %162 = vmatmul.msk.f32.vlgmr.msra.gmra.mxu2 %vm76_vm1, %v61_v8 }
  0x18   :  { %165 = vmatmul.msk.f32.vlgmr.msra.gmra.mxu3 %vm76_vm1, %v61_v8  ;;  %128 = vmatpush.msra.mxu1 %v63_v7 }
  0x19   :  { %161 = vmatmul.msk.f32.vlgmr.msra.gmra.mxu0 %vm76_vm1, %v60_v9  ;;  %164 = vmatmul.msk.f32.vlgmr.msra.gmra.mxu1 %vm76_vm1, %v60_v9 }
  0x96   :  { %v107_v13 = vpop.f32.mrf.mxu0  ;;  %v130_v14 = vpop.f32.mrf.mxu1 }
  0x97   :  { %v108_v15 = vadd.f32 %v107_v13, %v72_v11  ;;  %v131_v16 = vadd.f32 %v130_v14, %v73_v12 }
  0x99   :  { %136 = vst [vmem:[#allocation8] sm:$0xff] %v108_v15 }
  0x9a   :  { %v110_v17 = vpop.f32.mrf.mxu2  ;;  %137 = vst [vmem:[#allocation8 + $0x8] sm:$0xff] %v131_v16 }
  0x9b   :  { %v133_v18 = vpop.f32.mrf.mxu3  ;;  %v111_v19 = vadd.f32 %v110_v17, %v72_v11 }
  0x9c   :  { %v134_v20 = vadd.f32 %v133_v18, %v73_v12 }
  0x9d   :  { %138 = vst [vmem:[#allocation8 + $0x10] sm:$0x3f] %v111_v19 }
  0x9e   :  { %139 = vst [vmem:[#allocation8 + $0x18] sm:$0x3f] %v134_v20 }
  0x9f   :  { %152 = dma.vmem_to_hbm [thread:$0]  %s145_s29, 512, %s147_s5, [#allocation4], %s285_s20, %s285_s20, %s286_s21  }
  0xa0   :  { %282 = dma.done.wait [#allocation4], 512  }
  0xa1   :  { %283 = vsyncadd [#allocation4], 4294966784 }
  0xa2   :  { %157 = vsyncpa [#allocation3], 1 }
  0xa3   :  { %158 = vsyncpa [#allocation6], 1 }
  0xa4   :  { %159 = vsyncpa [#allocation4], 1 }

</bundles_post_ra>
